<compile_context>
chip_gen: v7x
topology: tpu7x:2x2x1
jax: 0.10.0
libtpu: 0.0.40
codegen_flags: <defaults>
</compile_context>

<pallas_src>
import jax
import jax.numpy as jnp
import numpy as np
from jax import lax
from jax.experimental import pallas as pl
from jax.experimental.pallas import tpu as pltpu

FEATS = 5        # fc1 / fc2 are Linear(5, 5)
W2_ROW = 8       # sublane-aligned start row of layer-2 params in packed buffer
PACK_ROWS = 16   # packed parameter buffer rows (multiple of 8 sublanes)


def pack_params(w1, b1, w2, b2):
    """One-time parameter packing (outside the forward):
         rows [0:5)   = W1^T      row 5  = b1
         rows [8:13)  = W2^T      row 13 = b2
       so the kernel needs exactly one parameter DMA and no per-call w.T."""
    p = jnp.zeros((PACK_ROWS, FEATS), jnp.float32)
    p = p.at[0:FEATS, :].set(w1.T.astype(jnp.float32))
    p = p.at[FEATS, :].set(b1.astype(jnp.float32))
    p = p.at[W2_ROW:W2_ROW + FEATS, :].set(w2.T.astype(jnp.float32))
    p = p.at[W2_ROW + FEATS, :].set(b2.astype(jnp.float32))
    return p


def net_kernel(x_ref, p_ref, o_ref):
    B = x_ref.shape[0]
    F = FEATS
    N = B * F

    # ---- parameters: one packed VMEM tile, static slices ----
    w1t = p_ref[0:F, :]                                   # (5, 5)
    b1 = p_ref[F:F + 1, :]                                # (1, 5)
    w2t = p_ref[W2_ROW:W2_ROW + F, :]                     # (5, 5)
    b2 = p_ref[W2_ROW + F:W2_ROW + F + 1, :]              # (1, 5)

    # ---- MLP (stays entirely in registers/VMEM) ----
    x = x_ref[...]
    h = jnp.maximum(jnp.dot(x, w1t, preferred_element_type=jnp.float32) + b1, 0.0)
    h = jnp.maximum(jnp.dot(h, w2t, preferred_element_type=jnp.float32) + b2, 0.0)

    # ---- grouped softmax over h.view(-1, B): group g = flat [g*B, (g+1)*B) ----
    p_idx = lax.broadcasted_iota(jnp.int32, (B, F), 0)
    q_idx = lax.broadcasted_iota(jnp.int32, (B, F), 1)
    flat_idx = p_idx * F + q_idx

    neg = jnp.float32(-1e30)
    masks, maskfs = [], []
    for g in range(F):
        m = jnp.logical_and(flat_idx >= g * B, flat_idx < (g + 1) * B)
        masks.append(m)
        maskfs.append(m.astype(jnp.float32))

    # Group maxima: full-tile reductions + disjoint-mask accumulation
    # (masks are disjoint and exactly cover the tile, so the sum is exact).
    gmax = jnp.zeros((B, F), jnp.float32)
    for g in range(F):
        m_g = jnp.max(jnp.where(masks[g], h, neg))        # scalar group max
        gmax = gmax + maskfs[g] * m_g

    e = jnp.exp(h - gmax)

    den = jnp.zeros((B, F), jnp.float32)
    for g in range(F):
        s_g = jnp.sum(maskfs[g] * e)                       # scalar group sum
        den = den + maskfs[g] * s_g

    prob = e * pl.reciprocal(den, approx=False)            # (B, F) grouped softmax

    # ---- in-kernel relayout: out[g, j] = prob_flat[g*B + j]  -> (F, B) ----
    # Flatten prob (row-major) to a (N, 1) column with exact one-hot selection.
    # T[k, r] = [k // F == r]   (built with inequalities, no vector div)
    kk_t = lax.broadcasted_iota(jnp.int32, (N, B), 0)
    rr_t = lax.broadcasted_iota(jnp.int32, (N, B), 1)
    T = jnp.logical_and(kk_t >= F * rr_t, kk_t < F * rr_t + F).astype(jnp.float32)

    # U[k, q] = [k % F == q]   (k // F via sum of compares; no vector div/mod)
    kk_u = lax.broadcasted_iota(jnp.int32, (N, F), 0)
    qq_u = lax.broadcasted_iota(jnp.int32, (N, F), 1)
    kdivF = jnp.zeros((N, F), jnp.int32)
    for m in range(1, B):
        kdivF = kdivF + (kk_u >= F * m).astype(jnp.int32)
    U = ((kk_u - F * kdivF) == qq_u).astype(jnp.float32)

    rep = jnp.dot(T, prob, preferred_element_type=jnp.float32)   # rep[k,:] = prob[k//F,:]
    pf = jnp.sum(rep * U, axis=1, keepdims=True)                 # pf[k] = prob_flat[k]

    # Pm[g, k] = [k // B == g],  Q[k, j] = [k % B == j]
    gg_p = lax.broadcasted_iota(jnp.int32, (F, N), 0)
    kk_p = lax.broadcasted_iota(jnp.int32, (F, N), 1)
    Pm = jnp.logical_and(kk_p >= B * gg_p, kk_p < B * gg_p + B).astype(jnp.float32)

    kk_q = lax.broadcasted_iota(jnp.int32, (N, B), 0)
    jj_q = lax.broadcasted_iota(jnp.int32, (N, B), 1)
    kdivB = jnp.zeros((N, B), jnp.int32)
    for m in range(1, F):
        kdivB = kdivB + (kk_q >= B * m).astype(jnp.int32)
    Q = ((kk_q - B * kdivB) == jj_q).astype(jnp.float32)

    # out[g, j] = pf[g*B + j]  — exact 0/1 pick, emitted directly as (F, B).
    o_ref[...] = jnp.dot(Pm, pf * Q, preferred_element_type=jnp.float32)


def net_forward(x, packed_params):
    """x: (B, 5) f32.  packed_params: (16, 5) f32 from pack_params.
       Returns the (5, B) softmax(out.view(-1, B), dim=1) directly."""
    B = x.shape[0]
    return pl.pallas_call(
        net_kernel,
        in_specs=[
            pl.BlockSpec(memory_space=pltpu.MemorySpace.VMEM),
            pl.BlockSpec(memory_space=pltpu.MemorySpace.VMEM),
        ],
        out_specs=pl.BlockSpec(memory_space=pltpu.MemorySpace.VMEM),
        out_shape=jax.ShapeDtypeStruct((FEATS, B), jnp.float32),
    )(x, packed_params)


net_forward_jit = jax.jit(net_forward)


def reference_forward(x, w1, b1, w2, b2):
    h = jax.nn.relu(x @ w1.T + b1)
    h = jax.nn.relu(h @ w2.T + b2)
    z = h.reshape(-1, x.shape[0])
    return jax.nn.softmax(z, axis=1)


if __name__ == "__main__":
    key = jax.random.PRNGKey(0)
    k_x, k_w1, k_w2 = jax.random.split(key, 3)

    B = 8
    x = jax.random.normal(k_x, (B, FEATS), dtype=jnp.float32)

    # nn.init.orthogonal_ on square weights -> orthogonal matrices; biases zero.
    w1 = jax.random.orthogonal(k_w1, FEATS, dtype=jnp.float32)
    w2 = jax.random.orthogonal(k_w2, FEATS, dtype=jnp.float32)
    b1 = jnp.zeros((FEATS,), dtype=jnp.float32)
    b2 = jnp.zeros((FEATS,), dtype=jnp.float32)

    packed = pack_params(w1, b1, w2, b2)

    out = net_forward_jit(x, packed)
    out = jax.block_until_ready(out)

    ref = reference_forward(x, w1, b1, w2, b2)
    np.testing.assert_allclose(np.asarray(out), np.asarray(ref),
                               rtol=1e-5, atol=1e-6)

    print("KERNEL_OK")
</pallas_src>

<mosaic_0001>
module attributes {stable_mosaic.version = 11 : i64} {
  func.func @net_kernel(%arg0: memref<8x5xf32, #tpu.memory_space<vmem>>, %arg1: memref<16x5xf32, #tpu.memory_space<vmem>>, %arg2: memref<5x8xf32, #tpu.memory_space<vmem>>) attributes {dimension_semantics = [], scalar_prefetch = 0 : i64, scratch_operands = 0 : i64, tpu.core_type = #tpu.core_type<tc>} {
    %c0 = arith.constant 0 : index
    %c0_0 = arith.constant 0 : index
    %0 = vector.load %arg1[%c0, %c0_0] : memref<16x5xf32, #tpu.memory_space<vmem>>, vector<5x5xf32>
    %c5 = arith.constant 5 : index
    %c0_1 = arith.constant 0 : index
    %1 = vector.load %arg1[%c5, %c0_1] : memref<16x5xf32, #tpu.memory_space<vmem>>, vector<1x5xf32>
    %c8 = arith.constant 8 : index
    %c0_2 = arith.constant 0 : index
    %2 = vector.load %arg1[%c8, %c0_2] : memref<16x5xf32, #tpu.memory_space<vmem>>, vector<5x5xf32>
    %c13 = arith.constant 13 : index
    %c0_3 = arith.constant 0 : index
    %3 = vector.load %arg1[%c13, %c0_3] : memref<16x5xf32, #tpu.memory_space<vmem>>, vector<1x5xf32>
    %c0_4 = arith.constant 0 : index
    %c0_5 = arith.constant 0 : index
    %4 = vector.load %arg0[%c0_4, %c0_5] : memref<8x5xf32, #tpu.memory_space<vmem>>, vector<8x5xf32>
    %cst = arith.constant dense<0.000000e+00> : vector<8x5xf32>
    %5 = tpu.matmul %4, %0, %cst {dimension_numbers = #tpu.dot_dimension_numbers<[1], [0], [0], [1], [0, 0, 1, 1], [], []>} : vector<8x5xf32>, vector<5x5xf32>, vector<8x5xf32> -> vector<8x5xf32>
    %6 = vector.broadcast %1 : vector<1x5xf32> to vector<8x5xf32>
    %7 = arith.addf %5, %6 : vector<8x5xf32>
    %cst_6 = arith.constant 0.000000e+00 : f32
    %8 = vector.broadcast %cst_6 : f32 to vector<8x5xf32>
    %9 = arith.maximumf %7, %8 : vector<8x5xf32>
    %cst_7 = arith.constant dense<0.000000e+00> : vector<8x5xf32>
    %10 = tpu.matmul %9, %2, %cst_7 {dimension_numbers = #tpu.dot_dimension_numbers<[1], [0], [0], [1], [0, 0, 1, 1], [], []>} : vector<8x5xf32>, vector<5x5xf32>, vector<8x5xf32> -> vector<8x5xf32>
    %11 = vector.broadcast %3 : vector<1x5xf32> to vector<8x5xf32>
    %12 = arith.addf %10, %11 : vector<8x5xf32>
    %cst_8 = arith.constant 0.000000e+00 : f32
    %13 = vector.broadcast %cst_8 : f32 to vector<8x5xf32>
    %14 = arith.maximumf %12, %13 : vector<8x5xf32>
    %15 = tpu.iota {dimensions = array<i32: 0>} : vector<8x5xi32>
    %16 = tpu.iota {dimensions = array<i32: 1>} : vector<8x5xi32>
    %c5_i32 = arith.constant 5 : i32
    %17 = vector.broadcast %c5_i32 : i32 to vector<8x5xi32>
    %18 = arith.muli %15, %17 : vector<8x5xi32>
    %19 = arith.addi %18, %16 : vector<8x5xi32>
    %c0_i32 = arith.constant 0 : i32
    %20 = vector.broadcast %c0_i32 : i32 to vector<8x5xi32>
    %21 = arith.cmpi sge, %19, %20 : vector<8x5xi32>
    %c8_i32 = arith.constant 8 : i32
    %22 = vector.broadcast %c8_i32 : i32 to vector<8x5xi32>
    %23 = arith.cmpi slt, %19, %22 : vector<8x5xi32>
    %24 = arith.andi %21, %23 : vector<8x5xi1>
    %25 = arith.extui %24 : vector<8x5xi1> to vector<8x5xi32>
    %26 = arith.sitofp %25 : vector<8x5xi32> to vector<8x5xf32>
    %c8_i32_9 = arith.constant 8 : i32
    %27 = vector.broadcast %c8_i32_9 : i32 to vector<8x5xi32>
    %28 = arith.cmpi sge, %19, %27 : vector<8x5xi32>
    %c16_i32 = arith.constant 16 : i32
    %29 = vector.broadcast %c16_i32 : i32 to vector<8x5xi32>
    %30 = arith.cmpi slt, %19, %29 : vector<8x5xi32>
    %31 = arith.andi %28, %30 : vector<8x5xi1>
    %32 = arith.extui %31 : vector<8x5xi1> to vector<8x5xi32>
    %33 = arith.sitofp %32 : vector<8x5xi32> to vector<8x5xf32>
    %c16_i32_10 = arith.constant 16 : i32
    %34 = vector.broadcast %c16_i32_10 : i32 to vector<8x5xi32>
    %35 = arith.cmpi sge, %19, %34 : vector<8x5xi32>
    %c24_i32 = arith.constant 24 : i32
    %36 = vector.broadcast %c24_i32 : i32 to vector<8x5xi32>
    %37 = arith.cmpi slt, %19, %36 : vector<8x5xi32>
    %38 = arith.andi %35, %37 : vector<8x5xi1>
    %39 = arith.extui %38 : vector<8x5xi1> to vector<8x5xi32>
    %40 = arith.sitofp %39 : vector<8x5xi32> to vector<8x5xf32>
    %c24_i32_11 = arith.constant 24 : i32
    %41 = vector.broadcast %c24_i32_11 : i32 to vector<8x5xi32>
    %42 = arith.cmpi sge, %19, %41 : vector<8x5xi32>
    %c32_i32 = arith.constant 32 : i32
    %43 = vector.broadcast %c32_i32 : i32 to vector<8x5xi32>
    %44 = arith.cmpi slt, %19, %43 : vector<8x5xi32>
    %45 = arith.andi %42, %44 : vector<8x5xi1>
    %46 = arith.extui %45 : vector<8x5xi1> to vector<8x5xi32>
    %47 = arith.sitofp %46 : vector<8x5xi32> to vector<8x5xf32>
    %c32_i32_12 = arith.constant 32 : i32
    %48 = vector.broadcast %c32_i32_12 : i32 to vector<8x5xi32>
    %49 = arith.cmpi sge, %19, %48 : vector<8x5xi32>
    %c40_i32 = arith.constant 40 : i32
    %50 = vector.broadcast %c40_i32 : i32 to vector<8x5xi32>
    %51 = arith.cmpi slt, %19, %50 : vector<8x5xi32>
    %52 = arith.andi %49, %51 : vector<8x5xi1>
    %53 = arith.extui %52 : vector<8x5xi1> to vector<8x5xi32>
    %54 = arith.sitofp %53 : vector<8x5xi32> to vector<8x5xf32>
    %cst_13 = arith.constant 0.000000e+00 : f32
    %55 = vector.broadcast %cst_13 : f32 to vector<8x5xf32>
    %cst_14 = arith.constant -1.000000e+30 : f32
    %56 = vector.broadcast %cst_14 : f32 to vector<8x5xf32>
    %57 = arith.select %24, %14, %56 : vector<8x5xi1>, vector<8x5xf32>
    %58 = vector.shape_cast %57 : vector<8x5xf32> to vector<1x8x5xf32>
    %cst_15 = arith.constant dense<0xFF800000> : vector<1xf32>
    %59 = vector.multi_reduction <maximumf>, %58, %cst_15 [1, 2] : vector<1x8x5xf32> to vector<1xf32>
    %60 = vector.shape_cast %59 : vector<1xf32> to vector<1x1x1xf32>
    %61 = vector.extract %60[0, 0, 0] : f32 from vector<1x1x1xf32>
    %62 = vector.broadcast %61 : f32 to vector<8x5xf32>
    %63 = arith.mulf %26, %62 : vector<8x5xf32>
    %64 = arith.addf %55, %63 : vector<8x5xf32>
    %cst_16 = arith.constant -1.000000e+30 : f32
    %65 = vector.broadcast %cst_16 : f32 to vector<8x5xf32>
    %66 = arith.select %31, %14, %65 : vector<8x5xi1>, vector<8x5xf32>
    %67 = vector.shape_cast %66 : vector<8x5xf32> to vector<1x8x5xf32>
    %cst_17 = arith.constant dense<0xFF800000> : vector<1xf32>
    %68 = vector.multi_reduction <maximumf>, %67, %cst_17 [1, 2] : vector<1x8x5xf32> to vector<1xf32>
    %69 = vector.shape_cast %68 : vector<1xf32> to vector<1x1x1xf32>
    %70 = vector.extract %69[0, 0, 0] : f32 from vector<1x1x1xf32>
    %71 = vector.broadcast %70 : f32 to vector<8x5xf32>
    %72 = arith.mulf %33, %71 : vector<8x5xf32>
    %73 = arith.addf %64, %72 : vector<8x5xf32>
    %cst_18 = arith.constant -1.000000e+30 : f32
    %74 = vector.broadcast %cst_18 : f32 to vector<8x5xf32>
    %75 = arith.select %38, %14, %74 : vector<8x5xi1>, vector<8x5xf32>
    %76 = vector.shape_cast %75 : vector<8x5xf32> to vector<1x8x5xf32>
    %cst_19 = arith.constant dense<0xFF800000> : vector<1xf32>
    %77 = vector.multi_reduction <maximumf>, %76, %cst_19 [1, 2] : vector<1x8x5xf32> to vector<1xf32>
    %78 = vector.shape_cast %77 : vector<1xf32> to vector<1x1x1xf32>
    %79 = vector.extract %78[0, 0, 0] : f32 from vector<1x1x1xf32>
    %80 = vector.broadcast %79 : f32 to vector<8x5xf32>
    %81 = arith.mulf %40, %80 : vector<8x5xf32>
    %82 = arith.addf %73, %81 : vector<8x5xf32>
    %cst_20 = arith.constant -1.000000e+30 : f32
    %83 = vector.broadcast %cst_20 : f32 to vector<8x5xf32>
    %84 = arith.select %45, %14, %83 : vector<8x5xi1>, vector<8x5xf32>
    %85 = vector.shape_cast %84 : vector<8x5xf32> to vector<1x8x5xf32>
    %cst_21 = arith.constant dense<0xFF800000> : vector<1xf32>
    %86 = vector.multi_reduction <maximumf>, %85, %cst_21 [1, 2] : vector<1x8x5xf32> to vector<1xf32>
    %87 = vector.shape_cast %86 : vector<1xf32> to vector<1x1x1xf32>
    %88 = vector.extract %87[0, 0, 0] : f32 from vector<1x1x1xf32>
    %89 = vector.broadcast %88 : f32 to vector<8x5xf32>
    %90 = arith.mulf %47, %89 : vector<8x5xf32>
    %91 = arith.addf %82, %90 : vector<8x5xf32>
    %cst_22 = arith.constant -1.000000e+30 : f32
    %92 = vector.broadcast %cst_22 : f32 to vector<8x5xf32>
    %93 = arith.select %52, %14, %92 : vector<8x5xi1>, vector<8x5xf32>
    %94 = vector.shape_cast %93 : vector<8x5xf32> to vector<1x8x5xf32>
    %cst_23 = arith.constant dense<0xFF800000> : vector<1xf32>
    %95 = vector.multi_reduction <maximumf>, %94, %cst_23 [1, 2] : vector<1x8x5xf32> to vector<1xf32>
    %96 = vector.shape_cast %95 : vector<1xf32> to vector<1x1x1xf32>
    %97 = vector.extract %96[0, 0, 0] : f32 from vector<1x1x1xf32>
    %98 = vector.broadcast %97 : f32 to vector<8x5xf32>
    %99 = arith.mulf %54, %98 : vector<8x5xf32>
    %100 = arith.addf %91, %99 : vector<8x5xf32>
    %101 = arith.subf %14, %100 : vector<8x5xf32>
    %102 = math.exp %101 : vector<8x5xf32>
    %cst_24 = arith.constant 0.000000e+00 : f32
    %103 = vector.broadcast %cst_24 : f32 to vector<8x5xf32>
    %104 = arith.mulf %26, %102 : vector<8x5xf32>
    %105 = vector.shape_cast %104 : vector<8x5xf32> to vector<1x8x5xf32>
    %cst_25 = arith.constant dense<0.000000e+00> : vector<1xf32>
    %106 = vector.multi_reduction <add>, %105, %cst_25 [1, 2] : vector<1x8x5xf32> to vector<1xf32>
    %107 = vector.shape_cast %106 : vector<1xf32> to vector<1x1x1xf32>
    %108 = vector.extract %107[0, 0, 0] : f32 from vector<1x1x1xf32>
    %109 = vector.broadcast %108 : f32 to vector<8x5xf32>
    %110 = arith.mulf %26, %109 : vector<8x5xf32>
    %111 = arith.addf %103, %110 : vector<8x5xf32>
    %112 = arith.mulf %33, %102 : vector<8x5xf32>
    %113 = vector.shape_cast %112 : vector<8x5xf32> to vector<1x8x5xf32>
    %cst_26 = arith.constant dense<0.000000e+00> : vector<1xf32>
    %114 = vector.multi_reduction <add>, %113, %cst_26 [1, 2] : vector<1x8x5xf32> to vector<1xf32>
    %115 = vector.shape_cast %114 : vector<1xf32> to vector<1x1x1xf32>
    %116 = vector.extract %115[0, 0, 0] : f32 from vector<1x1x1xf32>
    %117 = vector.broadcast %116 : f32 to vector<8x5xf32>
    %118 = arith.mulf %33, %117 : vector<8x5xf32>
    %119 = arith.addf %111, %118 : vector<8x5xf32>
    %120 = arith.mulf %40, %102 : vector<8x5xf32>
    %121 = vector.shape_cast %120 : vector<8x5xf32> to vector<1x8x5xf32>
    %cst_27 = arith.constant dense<0.000000e+00> : vector<1xf32>
    %122 = vector.multi_reduction <add>, %121, %cst_27 [1, 2] : vector<1x8x5xf32> to vector<1xf32>
    %123 = vector.shape_cast %122 : vector<1xf32> to vector<1x1x1xf32>
    %124 = vector.extract %123[0, 0, 0] : f32 from vector<1x1x1xf32>
    %125 = vector.broadcast %124 : f32 to vector<8x5xf32>
    %126 = arith.mulf %40, %125 : vector<8x5xf32>
    %127 = arith.addf %119, %126 : vector<8x5xf32>
    %128 = arith.mulf %47, %102 : vector<8x5xf32>
    %129 = vector.shape_cast %128 : vector<8x5xf32> to vector<1x8x5xf32>
    %cst_28 = arith.constant dense<0.000000e+00> : vector<1xf32>
    %130 = vector.multi_reduction <add>, %129, %cst_28 [1, 2] : vector<1x8x5xf32> to vector<1xf32>
    %131 = vector.shape_cast %130 : vector<1xf32> to vector<1x1x1xf32>
    %132 = vector.extract %131[0, 0, 0] : f32 from vector<1x1x1xf32>
    %133 = vector.broadcast %132 : f32 to vector<8x5xf32>
    %134 = arith.mulf %47, %133 : vector<8x5xf32>
    %135 = arith.addf %127, %134 : vector<8x5xf32>
    %136 = arith.mulf %54, %102 : vector<8x5xf32>
    %137 = vector.shape_cast %136 : vector<8x5xf32> to vector<1x8x5xf32>
    %cst_29 = arith.constant dense<0.000000e+00> : vector<1xf32>
    %138 = vector.multi_reduction <add>, %137, %cst_29 [1, 2] : vector<1x8x5xf32> to vector<1xf32>
    %139 = vector.shape_cast %138 : vector<1xf32> to vector<1x1x1xf32>
    %140 = vector.extract %139[0, 0, 0] : f32 from vector<1x1x1xf32>
    %141 = vector.broadcast %140 : f32 to vector<8x5xf32>
    %142 = arith.mulf %54, %141 : vector<8x5xf32>
    %143 = arith.addf %135, %142 : vector<8x5xf32>
    %144 = tpu.reciprocal %143 : vector<8x5xf32> -> vector<8x5xf32>
    %145 = arith.mulf %102, %144 : vector<8x5xf32>
    %146 = tpu.iota {dimensions = array<i32: 0>} : vector<40x8xi32>
    %147 = tpu.iota {dimensions = array<i32: 1>} : vector<40x8xi32>
    %c5_i32_30 = arith.constant 5 : i32
    %148 = vector.broadcast %c5_i32_30 : i32 to vector<40x8xi32>
    %149 = arith.muli %148, %147 : vector<40x8xi32>
    %150 = arith.cmpi sge, %146, %149 : vector<40x8xi32>
    %c5_i32_31 = arith.constant 5 : i32
    %151 = vector.broadcast %c5_i32_31 : i32 to vector<40x8xi32>
    %152 = arith.muli %151, %147 : vector<40x8xi32>
    %c5_i32_32 = arith.constant 5 : i32
    %153 = vector.broadcast %c5_i32_32 : i32 to vector<40x8xi32>
    %154 = arith.addi %152, %153 : vector<40x8xi32>
    %155 = arith.cmpi slt, %146, %154 : vector<40x8xi32>
    %156 = arith.andi %150, %155 : vector<40x8xi1>
    %157 = arith.extui %156 : vector<40x8xi1> to vector<40x8xi32>
    %158 = arith.sitofp %157 : vector<40x8xi32> to vector<40x8xf32>
    %159 = tpu.iota {dimensions = array<i32: 0>} : vector<40x5xi32>
    %160 = tpu.iota {dimensions = array<i32: 1>} : vector<40x5xi32>
    %c0_i32_33 = arith.constant 0 : i32
    %161 = vector.broadcast %c0_i32_33 : i32 to vector<40x5xi32>
    %c5_i32_34 = arith.constant 5 : i32
    %162 = vector.broadcast %c5_i32_34 : i32 to vector<40x5xi32>
    %163 = arith.cmpi sge, %159, %162 : vector<40x5xi32>
    %164 = arith.extui %163 : vector<40x5xi1> to vector<40x5xi32>
    %165 = arith.addi %161, %164 : vector<40x5xi32>
    %c10_i32 = arith.constant 10 : i32
    %166 = vector.broadcast %c10_i32 : i32 to vector<40x5xi32>
    %167 = arith.cmpi sge, %159, %166 : vector<40x5xi32>
    %168 = arith.extui %167 : vector<40x5xi1> to vector<40x5xi32>
    %169 = arith.addi %165, %168 : vector<40x5xi32>
    %c15_i32 = arith.constant 15 : i32
    %170 = vector.broadcast %c15_i32 : i32 to vector<40x5xi32>
    %171 = arith.cmpi sge, %159, %170 : vector<40x5xi32>
    %172 = arith.extui %171 : vector<40x5xi1> to vector<40x5xi32>
    %173 = arith.addi %169, %172 : vector<40x5xi32>
    %c20_i32 = arith.constant 20 : i32
    %174 = vector.broadcast %c20_i32 : i32 to vector<40x5xi32>
    %175 = arith.cmpi sge, %159, %174 : vector<40x5xi32>
    %176 = arith.extui %175 : vector<40x5xi1> to vector<40x5xi32>
    %177 = arith.addi %173, %176 : vector<40x5xi32>
    %c25_i32 = arith.constant 25 : i32
    %178 = vector.broadcast %c25_i32 : i32 to vector<40x5xi32>
    %179 = arith.cmpi sge, %159, %178 : vector<40x5xi32>
    %180 = arith.extui %179 : vector<40x5xi1> to vector<40x5xi32>
    %181 = arith.addi %177, %180 : vector<40x5xi32>
    %c30_i32 = arith.constant 30 : i32
    %182 = vector.broadcast %c30_i32 : i32 to vector<40x5xi32>
    %183 = arith.cmpi sge, %159, %182 : vector<40x5xi32>
    %184 = arith.extui %183 : vector<40x5xi1> to vector<40x5xi32>
    %185 = arith.addi %181, %184 : vector<40x5xi32>
    %c35_i32 = arith.constant 35 : i32
    %186 = vector.broadcast %c35_i32 : i32 to vector<40x5xi32>
    %187 = arith.cmpi sge, %159, %186 : vector<40x5xi32>
    %188 = arith.extui %187 : vector<40x5xi1> to vector<40x5xi32>
    %189 = arith.addi %185, %188 : vector<40x5xi32>
    %c5_i32_35 = arith.constant 5 : i32
    %190 = vector.broadcast %c5_i32_35 : i32 to vector<40x5xi32>
    %191 = arith.muli %190, %189 : vector<40x5xi32>
    %192 = arith.subi %159, %191 : vector<40x5xi32>
    %193 = arith.cmpi eq, %192, %160 : vector<40x5xi32>
    %194 = arith.extui %193 : vector<40x5xi1> to vector<40x5xi32>
    %195 = arith.sitofp %194 : vector<40x5xi32> to vector<40x5xf32>
    %cst_36 = arith.constant dense<0.000000e+00> : vector<40x5xf32>
    %196 = tpu.matmul %158, %145, %cst_36 {dimension_numbers = #tpu.dot_dimension_numbers<[1], [0], [0], [1], [0, 0, 1, 1], [], []>} : vector<40x8xf32>, vector<8x5xf32>, vector<40x5xf32> -> vector<40x5xf32>
    %197 = arith.mulf %196, %195 : vector<40x5xf32>
    %cst_37 = arith.constant dense<0.000000e+00> : vector<40xf32>
    %198 = vector.multi_reduction <add>, %197, %cst_37 [1] : vector<40x5xf32> to vector<40xf32>
    %199 = vector.shape_cast %198 : vector<40xf32> to vector<40x1xf32>
    %200 = tpu.iota {dimensions = array<i32: 0>} : vector<5x40xi32>
    %201 = tpu.iota {dimensions = array<i32: 1>} : vector<5x40xi32>
    %c8_i32_38 = arith.constant 8 : i32
    %202 = vector.broadcast %c8_i32_38 : i32 to vector<5x40xi32>
    %203 = arith.muli %202, %200 : vector<5x40xi32>
    %204 = arith.cmpi sge, %201, %203 : vector<5x40xi32>
    %c8_i32_39 = arith.constant 8 : i32
    %205 = vector.broadcast %c8_i32_39 : i32 to vector<5x40xi32>
    %206 = arith.muli %205, %200 : vector<5x40xi32>
    %c8_i32_40 = arith.constant 8 : i32
    %207 = vector.broadcast %c8_i32_40 : i32 to vector<5x40xi32>
    %208 = arith.addi %206, %207 : vector<5x40xi32>
    %209 = arith.cmpi slt, %201, %208 : vector<5x40xi32>
    %210 = arith.andi %204, %209 : vector<5x40xi1>
    %211 = arith.extui %210 : vector<5x40xi1> to vector<5x40xi32>
    %212 = arith.sitofp %211 : vector<5x40xi32> to vector<5x40xf32>
    %213 = tpu.iota {dimensions = array<i32: 0>} : vector<40x8xi32>
    %214 = tpu.iota {dimensions = array<i32: 1>} : vector<40x8xi32>
    %c0_i32_41 = arith.constant 0 : i32
    %215 = vector.broadcast %c0_i32_41 : i32 to vector<40x8xi32>
    %c8_i32_42 = arith.constant 8 : i32
    %216 = vector.broadcast %c8_i32_42 : i32 to vector<40x8xi32>
    %217 = arith.cmpi sge, %213, %216 : vector<40x8xi32>
    %218 = arith.extui %217 : vector<40x8xi1> to vector<40x8xi32>
    %219 = arith.addi %215, %218 : vector<40x8xi32>
    %c16_i32_43 = arith.constant 16 : i32
    %220 = vector.broadcast %c16_i32_43 : i32 to vector<40x8xi32>
    %221 = arith.cmpi sge, %213, %220 : vector<40x8xi32>
    %222 = arith.extui %221 : vector<40x8xi1> to vector<40x8xi32>
    %223 = arith.addi %219, %222 : vector<40x8xi32>
    %c24_i32_44 = arith.constant 24 : i32
    %224 = vector.broadcast %c24_i32_44 : i32 to vector<40x8xi32>
    %225 = arith.cmpi sge, %213, %224 : vector<40x8xi32>
    %226 = arith.extui %225 : vector<40x8xi1> to vector<40x8xi32>
    %227 = arith.addi %223, %226 : vector<40x8xi32>
    %c32_i32_45 = arith.constant 32 : i32
    %228 = vector.broadcast %c32_i32_45 : i32 to vector<40x8xi32>
    %229 = arith.cmpi sge, %213, %228 : vector<40x8xi32>
    %230 = arith.extui %229 : vector<40x8xi1> to vector<40x8xi32>
    %231 = arith.addi %227, %230 : vector<40x8xi32>
    %c8_i32_46 = arith.constant 8 : i32
    %232 = vector.broadcast %c8_i32_46 : i32 to vector<40x8xi32>
    %233 = arith.muli %232, %231 : vector<40x8xi32>
    %234 = arith.subi %213, %233 : vector<40x8xi32>
    %235 = arith.cmpi eq, %234, %214 : vector<40x8xi32>
    %236 = arith.extui %235 : vector<40x8xi1> to vector<40x8xi32>
    %237 = arith.sitofp %236 : vector<40x8xi32> to vector<40x8xf32>
    %238 = vector.broadcast %199 : vector<40x1xf32> to vector<40x8xf32>
    %239 = arith.mulf %238, %237 : vector<40x8xf32>
    %cst_47 = arith.constant dense<0.000000e+00> : vector<5x8xf32>
    %240 = tpu.matmul %212, %239, %cst_47 {dimension_numbers = #tpu.dot_dimension_numbers<[1], [0], [0], [1], [0, 0, 1, 1], [], []>} : vector<5x40xf32>, vector<40x8xf32>, vector<5x8xf32> -> vector<5x8xf32>
    %c0_48 = arith.constant 0 : index
    %c0_49 = arith.constant 0 : index
    %241 = vector.load %arg2[%c0_48, %c0_49] : memref<5x8xf32, #tpu.memory_space<vmem>>, vector<5x8xf32>
    tpu.vector_store %arg2[%c0_48, %c0_49], %240 {strides = array<i32>} : memref<5x8xf32, #tpu.memory_space<vmem>>, vector<5x8xf32>,
    return
  }
}

</mosaic_0001>

<bundles_post_ra>
// kernel: net_forward.1
= control target key start
LH: loop header
LB: loop body
LE: loop exit
PB: predicated region body
PF: predicated region fallthrough
CT: control target
= control target key end

     0   :  { %vm25_vm0 = vcmask 1044480   ;;  %v973_v2 = vmov 0.0   ;;  %vm974_vm1 = vmmov 0   ;;  %vm21_vm2 = vcmask 39936   ;;  %s1223_s0 = inlined_call_operand.vmem [shape: f32[8,5], index: 0, kind: input, shape index: {}]   ;;  %s1224_s1 = inlined_call_operand.vmem [shape: f32[16,5], index: 1, kind: input, shape index: {}]   ;;  %s1225_s2 = inlined_call_operand.hbm [shape: f32[5,8], index: 2, kind: output, shape index: {}]  }
   0x1   :  { %v12_v0 = vld [vmem:[%s1224_s1] sm:$0x1f]  ;;  %874 = vmatprep.subr.mxu1 %v973_v2  ;;  %876 = vmatprep.mubr.msk.f32.mxu1 %vm974_vm1, %v973_v2 }
   0x2   :  { %v16_v1 = vld [vmem:[%s1223_s0] sm:$0xff] }
   0x3   :  { %7 = vsyncpa [#allocation3], 0  ;;  %875 = vmatpush3.msk.msra.mxu1 %vm25_vm0, %v12_v0  ;;  %884 = vmatprep.subr.mxu0 %v973_v2  ;;  %v14_v3 = vld [vmem:[%s1224_s1 + $0x8] sm:$0x1f]  ;;  %v821_v4 = vld [vmem:[%s1224_s1 + $0x5] ss:$0 sm:$0xff]  ;;  %v181_v9 = vlaneseq }
   0x4   :  { %877 = vmatmul.mubr.msk.f32.vlgmr.msra.gmra.mrb[0].mxu1 %vm21_vm2, %v16_v1  ;;  %879 = vmatprep.subr.mxu1 %v973_v2  ;;  %v824_v14 = vld [vmem:[%s1224_s1 + $0xd] ss:$0 sm:$0xff]  ;;  %s977_s27 = smov [#allocation2]  }
   0x5   :  { %881 = vmatprep.mubr.msk.f32.mxu1 %vm974_vm1, %v973_v2  ;;  %886 = vmatprep.mubr.msk.f32.mxu0 %vm974_vm1, %v973_v2  ;;  %v1018_v10 = vshrl.u32 %v181_v9, 7  ;;  %v1020_v11 = vand.u32 127, %v181_v9  ;;  %s813_s28 = sshll.u32 %s977_s27, 4  ;;  %s814_s28 = int_to_ptr.vmem [resolvable:$true] %s813_s28 }
   0x6   :  { %880 = vmatpush3.msk.msra.mxu1 %vm25_vm0, %v14_v3  ;;  %s949_s29 = scalar_lea.vmem %s814_s28, 128  ;;  %p954_p1 = scmp.lt.s32.totalorder %s814_s28, %s814_s28 }
   0x7   :  { %v185_v12 = vmul.u32 5, %v1018_v10  ;;  %p950_p0 = scmp.ne.s32.totalorder %s814_s28, %s949_s29  ;;  %p955_p2 = scmp.lt.s32.totalorder %s949_s29, %s949_s29 }
   0x9   :  { %v186_v13 = vadd.s32 %v185_v12, %v1020_v11  ;;  %p956_p3 = por %p955_p2, %p954_p1 }
   0xb   :  { %vm197_vm3 = vcmp.ge.s32.totalorder %v186_v13, 16  ;;  %vm198_vm4 = vcmp.lt.s32.totalorder %v186_v13, 24  ;;  %vm187_vm5 = vcmp.ge.s32.totalorder %v186_v13, 0  ;;  %vm188_vm6 = vcmp.lt.s32.totalorder %v186_v13, 8  ;;  %p957_p4 = pnand %p956_p3, %p950_p0 }
   0xc   :  { %vm202_vm7 = vcmp.ge.s32.totalorder %v186_v13, 24  ;;  %vm203_vm8 = vcmp.lt.s32.totalorder %v186_v13, 32  ;;  %vm1027_vm9 = vmand %vm197_vm3, %vm198_vm4  ;;  %vm192_vm10 = vcmp.ge.s32.totalorder %v186_v13, 8  ;;  %vm193_vm11 = vcmp.lt.s32.totalorder %v186_v13, 16 }
   0xd   :  { %vm1031_vm12 = vmand %vm187_vm5, %vm188_vm6  ;;  %vm207_vm15 = vcmp.ge.s32.totalorder %v186_v13, 32  ;;  %vm208_vm0 = vcmp.lt.s32.totalorder %v186_v13, 40  ;;  %v1082_v9 = vsel %vm1027_vm9, 1.0, %v973_v2 }
   0xe   :  { %vm1037_vm13 = vmand %vm202_vm7, %vm203_vm8 }
   0xf   :  { %vm1041_vm14 = vmand %vm192_vm10, %vm193_vm11 }
  0x10   :  { %vm1059_vm3 = vmand %vm207_vm15, %vm208_vm0 }
  0x11   :  { %v1095_v18 = vsel %vm1059_vm3, 1.0, %v973_v2 }
  0xd7   :  { %v95_v5 = vpop.f32.mrb[0].mxu1 }
  0xd8   :  { %v96_v6 = vadd.f32 %v821_v4, %v95_v5  ;;  %v878_v7 = vpop.f32.mrb[1].mxu1 }
  0xd9   :  { %v1077_v7 = vsel %vm1041_vm14, 1.0, %v973_v2 }
  0xda   :  { %v99_v8 = vmax.f32 %v96_v6, 0.0  ;;  %v1072_v6 = vsel %vm1031_vm12, 1.0, %v973_v2 }
  0xdc   :  { %882 = vmatmul.mubr.msk.f32.vlgmr.msra.gmra.mrb[2].mxu1 %vm21_vm2, %v99_v8 }
  0xdd   :  { %911 = vmatprep.mubr.msk.f32.mxu1 %vm974_vm1, %v973_v2 }
 0x1af   :  { %v176_v15 = vpop.f32.mrb[2].mxu1 }
 0x1b0   :  { %v177_v16 = vadd.f32 %v824_v14, %v176_v15  ;;  %v883_v17 = vpop.f32.mrb[3].mxu1 }
 0x1b2   :  { %v1035_v20 = vmax.f32 %v177_v16, 0.0  ;;  %v1089_v16 = vsel %vm1037_vm13, 1.0, %v973_v2 }
 0x1b4   :  { %v240_v23 = vsel %vm1027_vm9, %v1035_v20, -1e+30  ;;  %v212_v24 = vsel %vm1031_vm12, %v1035_v20, -1e+30  ;;  %v254_v27 = vsel %vm1037_vm13, %v1035_v20, -1e+30 }
 0x1b5   :  { %v241_v25 = vsel %vm21_vm2, %v240_v23, -inf  ;;  %v213_v26 = vsel %vm21_vm2, %v212_v24, -inf  ;;  %v226_v28 = vsel %vm1041_vm14, %v1035_v20, -1e+30  ;;  %v255_v30 = vsel %vm21_vm2, %v254_v27, -inf }
 0x1b6   :  { %242 = vmax.xlane.f32.xlu1 %v241_v25  ;;  %214 = vmax.xlane.f32.xlu0 %v213_v26  ;;  %v227_v31 = vsel %vm21_vm2, %v226_v28, -inf  ;;  %v268_v32 = vsel %vm1059_vm3, %v1035_v20, -1e+30  ;;  %vm513_vm9 = vcmask 64512  }
 0x1b7   :  { %v269_v33 = vsel %vm21_vm2, %v268_v32, -inf }
 0x1ba   :  { %256 = vmax.xlane.f32.xlu1 %v255_v30  ;;  %228 = vmax.xlane.f32.xlu0 %v227_v31 }
 0x1be   :  { %270 = vmax.xlane.f32.xlu0 %v269_v33 }
 0x243   :  { %v243_v34 = vpop.xlane.xlu1 %242  ;;  %v215_v35 = vpop.xlane.xlu0 %214 }
 0x244   :  { %v244_v36 = vrot.slane %v243_v34, 4  ;;  %v216_v37 = vrot.slane %v215_v35, 4 }
 0x246   :  { %v245_v38 = vmax.f32 %v243_v34, %v244_v36  ;;  %v217_v39 = vmax.f32 %v215_v35, %v216_v37 }
 0x247   :  { %v257_v40 = vpop.xlane.xlu1 %256  ;;  %v229_v41 = vpop.xlane.xlu0 %228 }
 0x248   :  { %v246_v42 = vrot.slane %v245_v38, 2  ;;  %v218_v43 = vrot.slane %v217_v39, 2  ;;  %v258_v44 = vrot.slane %v257_v40, 4  ;;  %v230_v45 = vrot.slane %v229_v41, 4 }
 0x24a   :  { %v259_v46 = vmax.f32 %v257_v40, %v258_v44  ;;  %v231_v47 = vmax.f32 %v229_v41, %v230_v45  ;;  %v219_v48 = vmax.f32 %v217_v39, %v218_v43  ;;  %v247_v50 = vmax.f32 %v245_v38, %v246_v42 }
 0x24b   :  { %v271_v49 = vpop.xlane.xlu0 %270 }
 0x24c   :  { %v260_v51 = vrot.slane %v259_v46, 2  ;;  %v232_v52 = vrot.slane %v231_v47, 2  ;;  %v272_v53 = vrot.slane %v271_v49, 4  ;;  %v220_v54 = vrot.slane %v219_v48, 1 }
 0x24d   :  { %v248_v59 = vrot.slane %v247_v50, 1 }
 0x24e   :  { %v273_v55 = vmax.f32 %v271_v49, %v272_v53  ;;  %v221_v56 = vmax.f32 %v219_v48, %v220_v54  ;;  %v233_v57 = vmax.f32 %v231_v47, %v232_v52  ;;  %v261_v58 = vmax.f32 %v259_v46, %v260_v51 }
 0x24f   :  { %v249_v3 = vmax.f32 %v247_v50, %v248_v59 }
 0x250   :  { %v274_v60 = vrot.slane %v273_v55, 2  ;;  %920 = vpush %v221_v56  ;;  %v234_v61 = vrot.slane %v233_v57, 1  ;;  %v262_v62 = vrot.slane %v261_v58, 1 }
 0x252   :  { %v235_v63 = vmax.f32 %v233_v57, %v234_v61  ;;  %v263_v0 = vmax.f32 %v261_v58, %v262_v62  ;;  %v275_v1 = vmax.f32 %v273_v55, %v274_v60 }
 0x254   :  { %922 = vpush %v235_v63  ;;  %v276_v4 = vrot.slane %v275_v1, 1 }
 0x255   :  { %924 = vpush %v249_v3 }
 0x256   :  { %926 = vpush %v263_v0  ;;  %v277_v5 = vmax.f32 %v275_v1, %v276_v4 }
 0x258   :  { %928 = vpush %v277_v5 }
 0x281   :  { %s921_s1 = spop %920 }
 0x282   :  { %v223_v8 = vstv %s921_s1 }
 0x283   :  { %v224_v13 = vmul.f32 %v1072_v6, %v223_v8 }
 0x285   :  { %s923_s18 = spop %922 }
 0x286   :  { %v237_v12 = vstv %s923_s18  ;;  %s925_s19 = spop %924 }
 0x287   :  { %v238_v14 = vmul.f32 %v1077_v7, %v237_v12  ;;  %v251_v15 = vstv %s925_s19  ;;  %s927_s20 = spop %926 }
 0x288   :  { %v265_v17 = vstv %s927_s20  ;;  %v252_v22 = vmul.f32 %v1082_v9, %v251_v15 }
 0x289   :  { %v239_v19 = vadd.f32 %v238_v14, %v224_v13  ;;  %s929_s21 = spop %928  ;;  %v266_v25 = vmul.f32 %v1089_v16, %v265_v17 }
 0x28a   :  { %v279_v23 = vstv %s929_s21 }
 0x28b   :  { %v253_v24 = vadd.f32 %v252_v22, %v239_v19  ;;  %v280_v27 = vmul.f32 %v1095_v18, %v279_v23 }
 0x28d   :  { %v267_v26 = vadd.f32 %v266_v25, %v253_v24 }
 0x28f   :  { %v281_v21 = vadd.f32 %v280_v27, %v267_v26 }
 0x291   :  { %v282_v28 = vsub.f32 %v1035_v20, %v281_v21 }
 0x293   :  { %v283_v30 = vmul.f32 1.442695, %v282_v28 }
 0x295   :  { %945 = vpow2.f32 %v283_v30 }
 0x29f   :  { %v1100_v31 = vpop.eup %945 }
 0x2a0   :  { %v299_v32 = vmul.f32 %v1100_v31, %v1077_v7  ;;  %v285_v29 = vmul.f32 %v1100_v31, %v1072_v6  ;;  %v327_v35 = vmul.f32 %v1100_v31, %v1089_v16  ;;  %v313_v20 = vmul.f32 %v1100_v31, %v1082_v9 }
 0x2a1   :  { %v341_v38 = vmul.f32 %v1100_v31, %v1095_v18 }
 0x2a2   :  { %v300_v33 = vsel %vm21_vm2, %v299_v32, 0.0  ;;  %v286_v34 = vsel %vm21_vm2, %v285_v29, 0.0  ;;  %v328_v36 = vsel %vm21_vm2, %v327_v35, 0.0  ;;  %v314_v37 = vsel %vm21_vm2, %v313_v20, 0.0 }
 0x2a3   :  { %301 = vadd.xlane.f32.xlu0 %v300_v33  ;;  %287 = vadd.xlane.f32.xlu1 %v286_v34  ;;  %v342_v39 = vsel %vm21_vm2, %v341_v38, 0.0 }
 0x2a7   :  { %329 = vadd.xlane.f32.xlu0 %v328_v36  ;;  %315 = vadd.xlane.f32.xlu1 %v314_v37  ;;  %v1138_v36 = vadd.s32 24, %v1018_v10 }
 0x2ab   :  { %343 = vadd.xlane.f32.xlu1 %v342_v39 }
 0x330   :  { %v302_v40 = vpop.xlane.xlu0 %301  ;;  %v288_v41 = vpop.xlane.xlu1 %287 }
 0x331   :  { %v303_v42 = vrot.slane %v302_v40, 4  ;;  %v289_v43 = vrot.slane %v288_v41, 4 }
 0x333   :  { %v304_v44 = vadd.f32 %v303_v42, %v302_v40  ;;  %v290_v45 = vadd.f32 %v289_v43, %v288_v41  ;;  %v975_v41 = vmov 0  }
 0x334   :  { %v330_v46 = vpop.xlane.xlu0 %329  ;;  %v316_v47 = vpop.xlane.xlu1 %315 }
 0x335   :  { %v305_v48 = vrot.slane %v304_v44, 2  ;;  %v291_v49 = vrot.slane %v290_v45, 2  ;;  %v331_v50 = vrot.slane %v330_v46, 4  ;;  %v317_v51 = vrot.slane %v316_v47, 4 }
 0x337   :  { %v332_v52 = vadd.f32 %v331_v50, %v330_v46  ;;  %v318_v53 = vadd.f32 %v317_v51, %v316_v47  ;;  %v292_v54 = vadd.f32 %v291_v49, %v290_v45  ;;  %v306_v55 = vadd.f32 %v305_v48, %v304_v44 }
 0x338   :  { %v344_v56 = vpop.xlane.xlu1 %343 }
 0x339   :  { %v333_v57 = vrot.slane %v332_v52, 2  ;;  %v319_v58 = vrot.slane %v318_v53, 2  ;;  %v345_v59 = vrot.slane %v344_v56, 4  ;;  %v293_v60 = vrot.slane %v292_v54, 1 }
 0x33a   :  { %v307_v61 = vrot.slane %v306_v55, 1 }
 0x33b   :  { %v346_v62 = vadd.f32 %v345_v59, %v344_v56  ;;  %v294_v63 = vadd.f32 %v293_v60, %v292_v54  ;;  %v320_v0 = vadd.f32 %v319_v58, %v318_v53  ;;  %v334_v1 = vadd.f32 %v333_v57, %v332_v52 }
 0x33c   :  { %v308_v3 = vadd.f32 %v307_v61, %v306_v55 }
 0x33d   :  { %v347_v4 = vrot.slane %v346_v62, 2  ;;  %930 = vpush %v294_v63  ;;  %v321_v5 = vrot.slane %v320_v0, 1  ;;  %v335_v8 = vrot.slane %v334_v1, 1 }
 0x33e   :  { %932 = vpush %v308_v3 }
 0x33f   :  { %v322_v12 = vadd.f32 %v321_v5, %v320_v0  ;;  %v336_v13 = vadd.f32 %v335_v8, %v334_v1  ;;  %v348_v14 = vadd.f32 %v347_v4, %v346_v62 }
 0x341   :  { %934 = vpush %v322_v12  ;;  %v349_v15 = vrot.slane %v348_v14, 1 }
 0x342   :  { %936 = vpush %v336_v13 }
 0x343   :  { %v350_v17 = vadd.f32 %v349_v15, %v348_v14 }
 0x345   :  { %938 = vpush %v350_v17 }
 0x36e   :  { %s931_s22 = spop %930 }
 0x36f   :  { %v296_v19 = vstv %s931_s22  ;;  %s933_s23 = spop %932 }
 0x370   :  { %v297_v22 = vmul.f32 %v1072_v6, %v296_v19  ;;  %v310_v23 = vstv %s933_s23  ;;  %v361_v6 = vmul.u32 5, %v1020_v11 }
 0x371   :  { %v311_v24 = vmul.f32 %v1077_v7, %v310_v23 }
 0x372   :  { %s935_s24 = spop %934  ;;  %v367_v7 = vadd.s32 5, %v361_v6  ;;  %vm362_vm4 = vcmp.ge.s32.totalorder %v1018_v10, %v361_v6  ;;  %vm365_vm14 = vcmp.ge.s32.totalorder %v1138_v36, %v361_v6 }
 0x373   :  { %v324_v25 = vstv %s935_s24  ;;  %s937_s25 = spop %936  ;;  %v312_v26 = vadd.f32 %v311_v24, %v297_v22 }
 0x374   :  { %v325_v27 = vmul.f32 %v1082_v9, %v324_v25  ;;  %v338_v21 = vstv %s937_s25  ;;  %vm368_vm5 = vcmp.lt.s32.totalorder %v1018_v10, %v367_v7  ;;  %v1126_v9 = vadd.s32 8, %v1018_v10 }
 0x375   :  { %v339_v30 = vmul.f32 %v1089_v16, %v338_v21  ;;  %vm373_vm6 = vmand %vm362_vm4, %vm368_vm5  ;;  %v1131_v16 = vadd.s32 16, %v1018_v10  ;;  %vm371_vm15 = vcmp.lt.s32.totalorder %v1138_v36, %v367_v7 }
 0x376   :  { %v326_v28 = vadd.f32 %v325_v27, %v312_v26  ;;  %s939_s26 = spop %938  ;;  %vm363_vm7 = vcmp.ge.s32.totalorder %v1126_v9, %v361_v6  ;;  %vm369_vm8 = vcmp.lt.s32.totalorder %v1126_v9, %v367_v7  ;;  %v832_v20 = vsel %vm373_vm6, 1.0, %v973_v2  ;;  %vm376_vm0 = vmand %vm365_vm14, %vm371_vm15 }
 0x377   :  { %v352_v32 = vstv %s939_s26  ;;  %vm374_vm10 = vmand %vm363_vm7, %vm369_vm8  ;;  %vm364_vm11 = vcmp.ge.s32.totalorder %v1131_v16, %v361_v6  ;;  %vm370_vm12 = vcmp.lt.s32.totalorder %v1131_v16, %v367_v7  ;;  %v835_v39 = vsel %vm376_vm0, 1.0, %v973_v2 }
 0x378   :  { %v340_v29 = vadd.f32 %v339_v30, %v326_v28  ;;  %v353_v33 = vmul.f32 %v1095_v18, %v352_v32  ;;  %v833_v37 = vsel %vm374_vm10, 1.0, %v973_v2  ;;  %vm375_vm13 = vmand %vm364_vm11, %vm370_vm12  ;;  %vm399_vm6 = vcmp.ge.s32.totalorder %v1126_v9, 10 }
 0x379   :  { %v834_v38 = vsel %vm375_vm13, 1.0, %v973_v2  ;;  %v404_v42 = vsel %vm399_vm6, 1, %v975_v41  ;;  %vm388_vm7 = vcmp.ge.s32.totalorder %v1018_v10, 5  ;;  %vm414_vm8 = vcmp.ge.s32.totalorder %v1126_v9, 15 }
 0x37a   :  { %v354_v34 = vadd.f32 %v353_v33, %v340_v29  ;;  %v409_v43 = vadd.s32 1, %v404_v42  ;;  %v393_v44 = vsel %vm388_vm7, 1, %v975_v41  ;;  %v419_v45 = vsel %vm414_vm8, 1, %v975_v41 }
 0x37b   :  { %vm430_vm10 = vcmp.ge.s32.totalorder %v1131_v16, 20  ;;  %vm446_vm11 = vcmp.ge.s32.totalorder %v1138_v36, 25  ;;  %v488_v46 = vmul.u32 5, %v393_v44 }
 0x37c   :  { %947 = vrcp.f32 %v354_v34  ;;  %v424_v47 = vadd.s32 %v419_v45, %v409_v43  ;;  %v435_v48 = vsel %vm430_vm10, 1, %v975_v41  ;;  %v451_v49 = vsel %vm446_vm11, 1, %v975_v41 }
 0x37d   :  { %v493_v50 = vsub.s32 %v1018_v10, %v488_v46  ;;  %v440_v52 = vadd.s32 3, %v435_v48  ;;  %v456_v53 = vadd.s32 4, %v451_v49  ;;  %v639_v43 = vmul.u32 8, %v1018_v10 }
 0x37e   :  { %v489_v51 = vmul.u32 5, %v424_v47  ;;  %vm731_vm11 = vcmask 326656  }
 0x37f   :  { %vm498_vm12 = vcmp.eq.s32.totalorder %v493_v50, %v1020_v11  ;;  %v490_v56 = vmul.u32 5, %v440_v52  ;;  %v641_v45 = vadd.s32 8, %v639_v43  ;;  %vm640_vm7 = vcmp.ge.s32.totalorder %v1020_v11, %v639_v43 }
 0x380   :  { %v494_v55 = vsub.s32 %v1126_v9, %v489_v51  ;;  %v837_v59 = vsel %vm498_vm12, 1.0, %v973_v2 }
 0x381   :  { %v495_v60 = vsub.s32 %v1131_v16, %v490_v56  ;;  %vm642_vm8 = vcmp.lt.s32.totalorder %v1020_v11, %v641_v45 }
 0x382   :  { %vm499_vm13 = vcmp.eq.s32.totalorder %v494_v55, %v1020_v11  ;;  %vm643_vm10 = vmand %vm640_vm7, %vm642_vm8 }
 0x383   :  { %v838_v3 = vsel %vm499_vm13, 1.0, %v973_v2  ;;  %vm500_vm14 = vcmp.eq.s32.totalorder %v495_v60, %v1020_v11  ;;  %v847_v52 = vsel %vm643_vm10, 1.0, %v973_v2 }
 0x384   :  { %v839_v15 = vsel %vm500_vm14, 1.0, %v973_v2 }
 0x386   :  { %v948_v18 = vpop.eup %947 }
 0x387   :  { %v356_v35 = vmul.f32 %v948_v18, %v1100_v31  ;;  %v1147_v31 = vadd.s32 32, %v1018_v10  ;;  %v848_v18 = vadd.s32 4294967288, %v1126_v9 }
 0x389   :  { %885 = vmatpush3.msra.mxu0 %v356_v35  ;;  %vm366_vm3 = vcmp.ge.s32.totalorder %v1147_v31, %v361_v6  ;;  %vm372_vm4 = vcmp.lt.s32.totalorder %v1147_v31, %v367_v7  ;;  %v976_v7 = vmov 0.0|0.0   ;;  %v851_v44 = vadd.s32 4294967264, %v1147_v31 }
 0x38a   :  { %887 = vmatmul.mubr.msk.f32.vlgmr.msra.gmra.mrb[0].mxu0 %vm513_vm9, %v832_v20  ;;  %vm377_vm5 = vmand %vm366_vm3, %vm372_vm4  ;;  %914 = vmatprep.subr.bf16.mxu1 %v976_v7  ;;  %vm711_vm3 = vcmp.eq.s32.totalorder %v1018_v10, %v1020_v11  ;;  %vm712_vm4 = vcmp.eq.s32.totalorder %v848_v18, %v1020_v11 }
 0x38b   :  { %889 = vmatprep.mubr.msk.f32.mxu0 %vm974_vm1, %v973_v2  ;;  %v836_v40 = vsel %vm377_vm5, 1.0, %v973_v2  ;;  %v852_v35 = vsel %vm711_vm3, 1.0, %v973_v2  ;;  %vm715_vm6 = vcmp.eq.s32.totalorder %v851_v44, %v1020_v11 }
 0x38c   :  { %v856_v49 = vsel %vm715_vm6, 1.0, %v973_v2 }
 0x38e   :  { %890 = vmatmul.mubr.msk.f32.gmra.mrb[2].mxu0 %vm513_vm9, %v833_v37  ;;  %v853_v37 = vsel %vm712_vm4, 1.0, %v973_v2 }
 0x38f   :  { %892 = vmatprep.mubr.msk.f32.mxu0 %vm974_vm1, %v973_v2 }
 0x392   :  { %893 = vmatmul.mubr.msk.f32.gmra.mrb[4].mxu0 %vm513_vm9, %v834_v38  ;;  %v849_v38 = vadd.s32 4294967280, %v1131_v16 }
 0x393   :  { %895 = vmatprep.mubr.msk.f32.mxu0 %vm974_vm1, %v973_v2 }
 0x396   :  { %896 = vmatmul.mubr.msk.f32.gmra.mrb[6].mxu0 %vm513_vm9, %v835_v39  ;;  %v850_v39 = vadd.s32 4294967272, %v1138_v36 }
 0x397   :  { %898 = vmatprep.mubr.msk.f32.mxu0 %vm974_vm1, %v973_v2  ;;  %vm461_vm1 = vcmp.ge.s32.totalorder %v1138_v36, 30 }
 0x398   :  { %v466_v54 = vsel %vm461_vm1, 1, %v975_v41  ;;  %vm714_vm5 = vcmp.eq.s32.totalorder %v850_v39, %v1020_v11  ;;  %vm805_vm1 = vcmask 61440  }
 0x399   :  { %v471_v57 = vadd.s32 %v466_v54, %v456_v53  ;;  %v855_v16 = vsel %vm714_vm5, 1.0, %v973_v2 }
 0x39a   :  { %899 = vmatmul.mubr.msk.f32.gmra.mrb[8].mxu0 %vm513_vm9, %v836_v40  ;;  %vm477_vm9 = vcmp.ge.s32.totalorder %v1147_v31, 35 }
 0x39b   :  { %v482_v58 = vsel %vm477_vm9, 1, %v975_v41  ;;  %v491_v61 = vmul.u32 5, %v471_v57 }
 0x39c   :  { %v487_v62 = vadd.s32 6, %v482_v58 }
 0x39d   :  { %v496_v5 = vsub.s32 %v1138_v36, %v491_v61 }
 0x39e   :  { %v492_v8 = vmul.u32 5, %v487_v62 }
 0x39f   :  { %vm501_vm15 = vcmp.eq.s32.totalorder %v496_v5, %v1020_v11 }
 0x3a0   :  { %v497_v19 = vsub.s32 %v1147_v31, %v492_v8  ;;  %v840_v25 = vsel %vm501_vm15, 1.0, %v973_v2 }
 0x3a2   :  { %vm502_vm0 = vcmp.eq.s32.totalorder %v497_v19, %v1020_v11 }
 0x3a3   :  { %v841_v30 = vsel %vm502_vm0, 1.0, %v973_v2 }
 0x45d   :  { %v595_v63 = vpop.f32.mrb[0].mxu0 }
 0x45e   :  { %v619_v0 = vmul.f32 %v837_v59, %v595_v63  ;;  %v888_v1 = vpop.f32.mrb[1].mxu0 }
 0x460   :  { %v624_v4 = vsel %vm21_vm2, %v619_v0, 0.0 }
 0x461   :  { %625 = vadd.xlane.f32.xlu0 %v624_v4  ;;  %v600_v12 = vpop.f32.mrb[2].mxu0 }
 0x462   :  { %v620_v13 = vmul.f32 %v838_v3, %v600_v12  ;;  %v891_v14 = vpop.f32.mrb[3].mxu0 }
 0x464   :  { %v627_v17 = vsel %vm21_vm2, %v620_v13, 0.0 }
 0x465   :  { %628 = vadd.xlane.f32.xlu1 %v627_v17  ;;  %v605_v22 = vpop.f32.mrb[4].mxu0 }
 0x466   :  { %v621_v23 = vmul.f32 %v839_v15, %v605_v22  ;;  %v894_v24 = vpop.f32.mrb[5].mxu0 }
 0x468   :  { %v630_v26 = vsel %vm21_vm2, %v621_v23, 0.0 }
 0x469   :  { %631 = vadd.xlane.f32.xlu0 %v630_v26  ;;  %v610_v27 = vpop.f32.mrb[6].mxu0 }
 0x46a   :  { %v622_v21 = vmul.f32 %v840_v25, %v610_v27  ;;  %v897_v28 = vpop.f32.mrb[7].mxu0 }
 0x46c   :  { %v633_v32 = vsel %vm21_vm2, %v622_v21, 0.0 }
 0x46d   :  { %634 = vadd.xlane.f32.xlu1 %v633_v32  ;;  %v615_v29 = vpop.f32.mrb[8].mxu0 }
 0x46e   :  { %v623_v33 = vmul.f32 %v841_v30, %v615_v29  ;;  %v900_v6 = vpop.f32.mrb[9].mxu0 }
 0x470   :  { %v636_v34 = vsel %vm21_vm2, %v623_v33, 0.0  ;;  %vm713_vm2 = vcmp.eq.s32.totalorder %v849_v38, %v1020_v11 }
 0x471   :  { %637 = vadd.xlane.f32.xlu0 %v636_v34  ;;  %v854_v46 = vsel %vm713_vm2, 1.0, %v973_v2 }
 0x4ee   :  { %v626_v20 = vpop.xlane.xlu0 %625 }
 0x4ef   :  { %v726_v41 = vmul.f32 %v852_v35, %v626_v20 }
 0x4f2   :  { %v629_v40 = vpop.xlane.xlu1 %628 }
 0x4f3   :  { %v727_v42 = vmul.f32 %v853_v37, %v629_v40 }
 0x4f5   :  { %v915_v9 = vpack.c.bf16 %v727_v42, %v726_v41 }
 0x4f6   :  { %v632_v47 = vpop.xlane.xlu0 %631 }
 0x4f7   :  { %916 = vmatpush3.bf16.msra.mxu1 %v915_v9  ;;  %v728_v48 = vmul.f32 %v854_v46, %v632_v47 }
 0x4f8   :  { %917 = vmatprep.subr.bf16.mxu1 %v976_v7 }
 0x4fa   :  { %v635_v36 = vpop.xlane.xlu1 %634 }
 0x4fb   :  { %v729_v10 = vmul.f32 %v855_v16, %v635_v36 }
 0x4fd   :  { %v918_v31 = vpack.c.bf16 %v729_v10, %v728_v48 }
 0x4fe   :  { %v638_v50 = vpop.xlane.xlu0 %637 }
 0x4ff   :  { %919 = vmatpush3.bf16.msra.mxu1 %v918_v31  ;;  %v730_v51 = vmul.f32 %v856_v49, %v638_v50 }
 0x500   :  { %909 = vmatprep.subr.mxu1 %v973_v2 }
 0x503   :  { %910 = vmatpush3.msra.mxu1 %v730_v51 }
 0x504   :  { %912 = vmatmul.mubr.msk.f32.vlgmr.msra.gmra.mrb[4].mxu1 %vm731_vm11, %v847_v52 }
 0x5d7   :  { %v801_v53 = vpop.f32.mrb[4].mxu1 }
 0x5d8   :  { %806 = vst.msk [vmem:[#allocation2] sm:$0x1f] %vm805_vm1, %v801_v53  ;;  %v913_v11 = vpop.f32.mrb[5].mxu1 }
 0x5d9   :  { %960 = shalt.err (!%p957_p4)
}
 0x5da   :  { %s961_s4 = scalar_lea.hbm %s1225_s2, 128 }
 0x5db   :  { %p962_p5 = scmp.ne.s32.totalorder %s1225_s2, %s961_s4  ;;  %p965_p6 = scmp.lt.u32.totalorder %s961_s4, %s1225_s2 }
 0x5dd   :  { %p967_p7 = pnand %p965_p6, %p962_p5 }
 0x5df   :  { %970 = shalt.err (!%p967_p7)
}
 0x5e0   :  { %816 = dma.vmem_to_hbm [thread:$0]  %s814_s28, 128, %s1225_s2, [#allocation3]  }
 0x5e1   :  { %971 = dma.done.wait [#allocation3], 128  }
 0x5e2   :  { %972 = vsyncadd [#allocation3], 4294967168 }
 0x5e3   :  { %820 = vsyncpa [#allocation3], 1 }

</bundles_post_ra>
